<compile_context>
chip_gen: v5e
topology: v5e:2x2
jax: 0.10.0
libtpu: 0.0.40
codegen_flags: <defaults>
</compile_context>

<pallas_src>
import functools

import jax
import jax.numpy as jnp
import numpy as np
from jax import lax
from jax.experimental import pallas as pl
from jax.experimental.pallas import tpu as pltpu

HIDDEN = 256


def _round_up(x, m):
    return (x + m - 1) // m * m


def _critic_kernel(x_ref, w1_ref, b1_ref, w2_ref, b2_ref, w3_ref, b3_ref, o_ref):
    x = x_ref[...]                                            # (TB, D_in) bf16

    # fc1: bf16 MXU matmul (K=32, issue-bound; accepted), f32 accumulation.
    h1 = jnp.dot(x, w1_ref[...], preferred_element_type=jnp.float32)
    h1 = jnp.maximum(h1 + b1_ref[...], 0.0)

    # fc2: the dominant 256x256 matmul.
    h2 = jnp.dot(h1.astype(jnp.bfloat16), w2_ref[...],
                 preferred_element_type=jnp.float32)
    h2 = jnp.maximum(h2 + b2_ref[...], 0.0)

    # fc3 (out dim = 1): MXU dot_general contracting over HIDDEN to produce a
    # lane-dense (1, TILE_B) row.  Costs only ~TILE_B/256 extra MXU pushes and
    # removes the VPU multiply + XLU reduce and the masked (TILE_B,1) stores.
    o = lax.dot_general(w3_ref[...], h2.astype(jnp.bfloat16),
                        dimension_numbers=(((1,), (1,)), ((), ())),
                        preferred_element_type=jnp.float32)   # (1, TILE_B)
    o_ref[...] = o + b3_ref[0]


@functools.partial(jax.jit, static_argnames=("block_b",))
def critic_forward(state, action, params, *, block_b=2048):
    """state: (B, 2*state_size), action: (B, 2*action_size), float32.

    `params` must come from prepare_params() (w1/w2/w3 already bf16).
    """
    w1, b1, w2, b2, w3, b3 = params
    B = state.shape[0]
    d_in = state.shape[1] + action.shape[1]

    # Fold torch.cat into the wrapper so fc1 is a single fused matmul, and
    # cast the streamed input to bf16 (halves input DMA traffic).
    x = jnp.concatenate([state, action], axis=1).astype(jnp.bfloat16)

    # Batch tiling: cap the tile at ceil(B/2) (rounded to 8) so the grid has
    # at least 2 steps whenever B > 8 -> both v7x TensorCores get work.
    half = _round_up(max(1, -(-B // 2)), 8)
    tile_b = max(8, min(block_b, half))
    b_pad = _round_up(B, tile_b)
    if b_pad != B:
        x = jnp.pad(x, ((0, b_pad - B), (0, 0)))
    n_tiles = b_pad // tile_b

    out = pl.pallas_call(
        _critic_kernel,
        # Lane-dense output: one (1, tile_b) f32 row per grid step.
        out_shape=jax.ShapeDtypeStruct((n_tiles, 1, tile_b), jnp.float32),
        grid=(n_tiles,),
        in_specs=[
            pl.BlockSpec((tile_b, d_in), lambda i: (i, 0)),       # x tile (streamed)
            pl.BlockSpec((d_in, HIDDEN), lambda i: (0, 0)),       # w1 (resident)
            pl.BlockSpec((1, HIDDEN), lambda i: (0, 0)),          # b1 (resident)
            pl.BlockSpec((HIDDEN, HIDDEN), lambda i: (0, 0)),     # w2 (resident)
            pl.BlockSpec((1, HIDDEN), lambda i: (0, 0)),          # b2 (resident)
            pl.BlockSpec((1, HIDDEN), lambda i: (0, 0)),          # w3 row (resident)
            pl.BlockSpec(memory_space=pltpu.MemorySpace.SMEM),    # b3 scalar
        ],
        out_specs=pl.BlockSpec((None, 1, tile_b), lambda i: (i, 0, 0)),
        compiler_params=pltpu.CompilerParams(
            dimension_semantics=("parallel",),       # megacore sharding on v7x
            vmem_limit_bytes=32 * 1024 * 1024,       # safe on v5e/v6e/v7x (64 MiB phys)
        ),
    )(x, w1, b1, w2, b2, w3, b3)

    # (n_tiles, 1, tile_b) -> (b_pad, 1) in batch order, drop padded rows.
    return out.reshape(b_pad, 1)[:B]


def init_critic_params(key, state_size, action_size):
    """Mirror the PyTorch module's shapes/init ranges (f32 master copy).

    fc1: (2*(state_size+action_size)) -> 256, weight ~ U(-1/sqrt(256), 1/sqrt(256))
         (hidden_init uses weight.size()[0] == out_features, as in the reference)
    fc2: 256 -> 256, same range
    fc3: 256 -> 1, weight ~ U(-3e-3, 3e-3)
    biases: PyTorch Linear default U(-1/sqrt(fan_in), 1/sqrt(fan_in))
    w1/w2 are stored transposed to (in, out); w3 is kept as a (1, 256) row.
    """
    d_in = 2 * (state_size + action_size)
    ks = jax.random.split(key, 6)
    lim_h = 1.0 / np.sqrt(HIDDEN)

    w1 = jax.random.uniform(ks[0], (d_in, HIDDEN), jnp.float32, -lim_h, lim_h)
    b1 = jax.random.uniform(ks[1], (1, HIDDEN), jnp.float32,
                            -1.0 / np.sqrt(d_in), 1.0 / np.sqrt(d_in))
    w2 = jax.random.uniform(ks[2], (HIDDEN, HIDDEN), jnp.float32, -lim_h, lim_h)
    b2 = jax.random.uniform(ks[3], (1, HIDDEN), jnp.float32, -lim_h, lim_h)
    w3 = jax.random.uniform(ks[4], (1, HIDDEN), jnp.float32, -3e-3, 3e-3)
    b3 = jax.random.uniform(ks[5], (1,), jnp.float32, -lim_h, lim_h)
    return (w1, b1, w2, b2, w3, b3)


def prepare_params(params):
    """One-time bf16 cast of the matmul weights (done OUTSIDE the jitted call)."""
    w1, b1, w2, b2, w3, b3 = params
    return (w1.astype(jnp.bfloat16), b1,
            w2.astype(jnp.bfloat16), b2,
            w3.astype(jnp.bfloat16), b3)


def _reference_forward(state, action, prepared_params):
    """Plain-JAX reference using the same bf16-matmul / f32-accumulate math."""
    w1, b1, w2, b2, w3, b3 = prepared_params
    x = jnp.concatenate([state, action], axis=1).astype(jnp.bfloat16)
    h1 = jnp.maximum(
        jnp.dot(x, w1, preferred_element_type=jnp.float32) + b1, 0.0)
    h2 = jnp.maximum(
        jnp.dot(h1.astype(jnp.bfloat16), w2,
                preferred_element_type=jnp.float32) + b2, 0.0)
    o = jnp.dot(h2.astype(jnp.bfloat16), w3.T,
                preferred_element_type=jnp.float32) + b3[0]
    return o


if __name__ == "__main__":
    # Critic(state_size=12, action_size=4) -> FCNetwork(16, 1): fc1 expects 32
    # input features, so the (multi-agent) inputs are state (B, 24), action (B, 8).
    state_size, action_size = 12, 4

    key = jax.random.PRNGKey(0)
    k_params, k_s, k_a = jax.random.split(key, 3)
    params = prepare_params(init_critic_params(k_params, state_size, action_size))

    # Small demo batch (single grid step).
    B = 2
    state = jax.random.normal(k_s, (B, 2 * state_size), jnp.float32)
    action = jax.random.normal(k_a, (B, 2 * action_size), jnp.float32)
    out = jax.block_until_ready(critic_forward(state, action, params))
    ref = _reference_forward(state, action, params)
    np.testing.assert_allclose(np.asarray(out), np.asarray(ref),
                               rtol=5e-3, atol=5e-3)
    assert out.shape == (B, 1) and out.dtype == jnp.float32

    # Ragged, multi-tile batch to exercise the grid, padding and slicing path.
    B2 = 50
    k_s2, k_a2 = jax.random.split(jax.random.PRNGKey(1), 2)
    state2 = jax.random.normal(k_s2, (B2, 2 * state_size), jnp.float32)
    action2 = jax.random.normal(k_a2, (B2, 2 * action_size), jnp.float32)
    out2 = jax.block_until_ready(
        critic_forward(state2, action2, params, block_b=16))
    ref2 = _reference_forward(state2, action2, params)
    np.testing.assert_allclose(np.asarray(out2), np.asarray(ref2),
                               rtol=5e-3, atol=5e-3)
    assert out2.shape == (B2, 1) and out2.dtype == jnp.float32

    # Larger batch: exercises the >=2-tile (v7x megacore) default tiling path.
    B3 = 1000
    k_s3, k_a3 = jax.random.split(jax.random.PRNGKey(2), 2)
    state3 = jax.random.normal(k_s3, (B3, 2 * state_size), jnp.float32)
    action3 = jax.random.normal(k_a3, (B3, 2 * action_size), jnp.float32)
    out3 = jax.block_until_ready(critic_forward(state3, action3, params))
    ref3 = _reference_forward(state3, action3, params)
    np.testing.assert_allclose(np.asarray(out3), np.asarray(ref3),
                               rtol=5e-3, atol=5e-3)
    assert out3.shape == (B3, 1) and out3.dtype == jnp.float32

    print("KERNEL_OK")
</pallas_src>

<mosaic_0001>
module attributes {stable_mosaic.version = 11 : i64} {
  func.func @_critic_kernel(%arg0: i32, %arg1: memref<8x32xbf16, #tpu.memory_space<vmem>>, %arg2: memref<32x256xbf16, #tpu.memory_space<vmem>>, %arg3: memref<1x256xf32, #tpu.memory_space<vmem>>, %arg4: memref<256x256xbf16, #tpu.memory_space<vmem>>, %arg5: memref<1x256xf32, #tpu.memory_space<vmem>>, %arg6: memref<1x256xbf16, #tpu.memory_space<vmem>>, %arg7: memref<1xf32, #tpu.memory_space<smem>>, %arg8: memref<1x1x8xf32, #tpu.memory_space<vmem>>) attributes {dimension_semantics = [#tpu.dimension_semantics<parallel>], iteration_bounds = array<i64: 1>, scalar_prefetch = 0 : i64, scratch_operands = 0 : i64, tpu.core_type = #tpu.core_type<tc>, window_params = [{transform_indices = @transform_0, window_bounds = array<i64: 8, 32>}, {pipeline_mode = #tpu.pipeline_mode<synchronous>, transform_indices = @transform_1, window_bounds = array<i64: 32, 256>}, {pipeline_mode = #tpu.pipeline_mode<synchronous>, transform_indices = @transform_2, window_bounds = array<i64: 1, 256>}, {pipeline_mode = #tpu.pipeline_mode<synchronous>, transform_indices = @transform_3, window_bounds = array<i64: 256, 256>}, {pipeline_mode = #tpu.pipeline_mode<synchronous>, transform_indices = @transform_4, window_bounds = array<i64: 1, 256>}, {pipeline_mode = #tpu.pipeline_mode<synchronous>, transform_indices = @transform_5, window_bounds = array<i64: 1, 256>}, {transform_indices = @transform_6, window_bounds = array<i64: 1>}, {transform_indices = @transform_7, window_bounds = array<i64: 1, 1, 8>}]} {
    %c0 = arith.constant 0 : index
    %c0_0 = arith.constant 0 : index
    %0 = vector.load %arg1[%c0, %c0_0] : memref<8x32xbf16, #tpu.memory_space<vmem>>, vector<8x32xbf16>
    %c0_1 = arith.constant 0 : index
    %c0_2 = arith.constant 0 : index
    %1 = vector.load %arg2[%c0_1, %c0_2] : memref<32x256xbf16, #tpu.memory_space<vmem>>, vector<32x256xbf16>
    %cst = arith.constant dense<0.000000e+00> : vector<8x256xf32>
    %2 = tpu.matmul %0, %1, %cst {dimension_numbers = #tpu.dot_dimension_numbers<[1], [0], [0], [1], [0, 0, 1, 1], [], []>} : vector<8x32xbf16>, vector<32x256xbf16>, vector<8x256xf32> -> vector<8x256xf32>
    %c0_3 = arith.constant 0 : index
    %c0_4 = arith.constant 0 : index
    %3 = vector.load %arg3[%c0_3, %c0_4] : memref<1x256xf32, #tpu.memory_space<vmem>>, vector<1x256xf32>
    %4 = vector.broadcast %3 : vector<1x256xf32> to vector<8x256xf32>
    %5 = arith.addf %2, %4 : vector<8x256xf32>
    %cst_5 = arith.constant 0.000000e+00 : f32
    %6 = vector.broadcast %cst_5 : f32 to vector<8x256xf32>
    %7 = arith.maximumf %5, %6 : vector<8x256xf32>
    %8 = arith.truncf %7 : vector<8x256xf32> to vector<8x256xbf16>
    %c0_6 = arith.constant 0 : index
    %c0_7 = arith.constant 0 : index
    %9 = vector.load %arg4[%c0_6, %c0_7] : memref<256x256xbf16, #tpu.memory_space<vmem>>, vector<256x256xbf16>
    %cst_8 = arith.constant dense<0.000000e+00> : vector<8x256xf32>
    %10 = tpu.matmul %8, %9, %cst_8 {dimension_numbers = #tpu.dot_dimension_numbers<[1], [0], [0], [1], [0, 0, 1, 1], [], []>} : vector<8x256xbf16>, vector<256x256xbf16>, vector<8x256xf32> -> vector<8x256xf32>
    %c0_9 = arith.constant 0 : index
    %c0_10 = arith.constant 0 : index
    %11 = vector.load %arg5[%c0_9, %c0_10] : memref<1x256xf32, #tpu.memory_space<vmem>>, vector<1x256xf32>
    %12 = vector.broadcast %11 : vector<1x256xf32> to vector<8x256xf32>
    %13 = arith.addf %10, %12 : vector<8x256xf32>
    %cst_11 = arith.constant 0.000000e+00 : f32
    %14 = vector.broadcast %cst_11 : f32 to vector<8x256xf32>
    %15 = arith.maximumf %13, %14 : vector<8x256xf32>
    %c0_12 = arith.constant 0 : index
    %c0_13 = arith.constant 0 : index
    %16 = vector.load %arg6[%c0_12, %c0_13] : memref<1x256xbf16, #tpu.memory_space<vmem>>, vector<1x256xbf16>
    %17 = arith.truncf %15 : vector<8x256xf32> to vector<8x256xbf16>
    %cst_14 = arith.constant dense<0.000000e+00> : vector<1x8xf32>
    %18 = tpu.matmul %16, %17, %cst_14 {dimension_numbers = #tpu.dot_dimension_numbers<[1], [1], [0], [0], [0, 0, 1, 0], [], []>} : vector<1x256xbf16>, vector<8x256xbf16>, vector<1x8xf32> -> vector<1x8xf32>
    %c0_15 = arith.constant 0 : index
    %19 = memref.load %arg7[%c0_15] : memref<1xf32, #tpu.memory_space<smem>>
    %20 = vector.broadcast %19 : f32 to vector<1x8xf32>
    %21 = arith.addf %18, %20 : vector<1x8xf32>
    %c0_16 = arith.constant 0 : index
    %c0_17 = arith.constant 0 : index
    %c0_18 = arith.constant 0 : index
    %22 = vector.load %arg8[%c0_16, %c0_17, %c0_18] : memref<1x1x8xf32, #tpu.memory_space<vmem>>, vector<1x1x8xf32>
    %23 = vector.shape_cast %22 : vector<1x1x8xf32> to vector<1x8xf32>
    %24 = vector.shape_cast %21 : vector<1x8xf32> to vector<1x1x8xf32>
    tpu.vector_store %arg8[%c0_16, %c0_17, %c0_18], %24 {strides = array<i32>} : memref<1x1x8xf32, #tpu.memory_space<vmem>>, vector<1x1x8xf32>,
    return
  }
  func.func @transform_0(%arg0: i32) -> (i32, i32) {
    %c0_i32 = arith.constant 0 : i32
    %c0_i32_0 = arith.constant 0 : i32
    return %arg0, %c0_i32 : i32, i32
  }
  func.func @transform_1(%arg0: i32) -> (i32, i32) {
    %c0_i32 = arith.constant 0 : i32
    %c0_i32_0 = arith.constant 0 : i32
    %c0_i32_1 = arith.constant 0 : i32
    return %c0_i32, %c0_i32_0 : i32, i32
  }
  func.func @transform_2(%arg0: i32) -> (i32, i32) {
    %c0_i32 = arith.constant 0 : i32
    %c0_i32_0 = arith.constant 0 : i32
    %c0_i32_1 = arith.constant 0 : i32
    return %c0_i32, %c0_i32_0 : i32, i32
  }
  func.func @transform_3(%arg0: i32) -> (i32, i32) {
    %c0_i32 = arith.constant 0 : i32
    %c0_i32_0 = arith.constant 0 : i32
    %c0_i32_1 = arith.constant 0 : i32
    return %c0_i32, %c0_i32_0 : i32, i32
  }
  func.func @transform_4(%arg0: i32) -> (i32, i32) {
    %c0_i32 = arith.constant 0 : i32
    %c0_i32_0 = arith.constant 0 : i32
    %c0_i32_1 = arith.constant 0 : i32
    return %c0_i32, %c0_i32_0 : i32, i32
  }
  func.func @transform_5(%arg0: i32) -> (i32, i32) {
    %c0_i32 = arith.constant 0 : i32
    %c0_i32_0 = arith.constant 0 : i32
    %c0_i32_1 = arith.constant 0 : i32
    return %c0_i32, %c0_i32_0 : i32, i32
  }
  func.func @transform_6(%arg0: i32) -> i32 {
    %c0_i32 = arith.constant 0 : i32
    %c0_i32_0 = arith.constant 0 : i32
    return %c0_i32 : i32
  }
  func.func @transform_7(%arg0: i32) -> (i32, i32, i32) {
    %c0_i32 = arith.constant 0 : i32
    %c0_i32_0 = arith.constant 0 : i32
    %c0_i32_1 = arith.constant 0 : i32
    return %arg0, %c0_i32, %c0_i32_0 : i32, i32, i32
  }
}

</mosaic_0001>

<bundles_post_ra>
// kernel: critic_forward.1
= control target key start
LH: loop header
LB: loop body
LE: loop exit
PB: predicated region body
PF: predicated region fallthrough
CT: control target
= control target key end

     0   :  { %13 = vsyncpa [#allocation4], 0  ;;  %s730_s0 = inlined_call_operand.vmem [shape: bf16[8,32], index: 0, kind: input, shape index: {}]   ;;  %s731_s1 = inlined_call_operand.hbm [shape: bf16[32,256], index: 1, kind: input, shape index: {}]   ;;  %s732_s2 = inlined_call_operand.vmem [shape: f32[1,256], index: 2, kind: input, shape index: {}]   ;;  %s733_s3 = inlined_call_operand.hbm [shape: bf16[256,256], index: 3, kind: input, shape index: {}]   ;;  %s734_s4 = inlined_call_operand.vmem [shape: f32[1,256], index: 4, kind: input, shape index: {}]   ;;  %s735_s5 = inlined_call_operand.vmem [shape: bf16[1,256], index: 5, kind: input, shape index: {}]   ;;  %s736_s6 = inlined_call_operand.<no memory space> [shape: f32[1], index: 6, kind: input, shape index: {}]   ;;  %s737_s7 = inlined_call_operand.vmem [shape: f32[1,1,8], index: 7, kind: output, shape index: {}]  }
   0x1   :  { %s21_s26 = sshll.u32 %s731_s1, 4  ;;  %s22_s26 = int_to_ptr.hbm [resolvable:$true] %s21_s26 }
   0x2   :  { %14 = vsyncpa [#allocation6], 0  ;;  %s660_s27 = smov [#allocation3]   ;;  %s36_s8 = sshll.u32 %s733_s3, 4  ;;  %s37_s8 = int_to_ptr.hbm [resolvable:$true] %s36_s8 }
   0x3   :  { %s23_s28 = sshll.u32 %s660_s27, 4  ;;  %s661_s9 = smov 128   ;;  %s24_s28 = int_to_ptr.vmem [resolvable:$true] %s23_s28 }
   0x4   :  { %s662_s10 = smov 8   ;;  %s663_s11 = smov [#allocation5]  }
   0x5   :  { %29 = dma.hbm_to_vmem [thread:$0]  %s22_s26, 512, %s24_s28, [#allocation4], %s661_s9, %s661_s9, %s662_s10  }
   0x6   :  { %s38_s12 = sshll.u32 %s663_s11, 4  ;;  %s39_s12 = int_to_ptr.vmem [resolvable:$true] %s38_s12 }
   0x7   :  { %44 = dma.hbm_to_vmem [thread:$0]  %s37_s8, 4096, %s39_s12, [#allocation6], %s661_s9, %s661_s9, %s662_s10  }
   0x8   :  { %656 = dma.done.wait [#allocation4], 512  }
   0x9   :  { %657 = vsyncadd [#allocation4], 4294966784 }
   0xa   :  { %658 = dma.done.wait [#allocation6], 4096  }
   0xb   :  { %659 = vsyncadd [#allocation6], 4294963200  ;;  %v432_v0 = vld [vmem:[#allocation3 + $0x10] sm:$0xf]  ;;  %v571_v1 = vld [vmem:[#allocation3 + $0x14] sm:$0xf0] }
   0xc   :  { %v570_v2 = vld [vmem:[#allocation3 + $0x14] sm:$0xf]  ;;  %v433_v3 = vor.u32 %v571_v1, %v432_v0  ;;  %v434_v4 = vld [vmem:[#allocation3 + $0x18] sm:$0xf0]  ;;  %v424_v5 = vld [vmem:[#allocation3] sm:$0xf] }
   0xd   :  { %v569_v6 = vld [vmem:[#allocation3 + $0x4] sm:$0xf0]  ;;  %v437_v7 = vor.u32 %v570_v2, %v434_v4  ;;  %v568_v8 = vld [vmem:[#allocation3 + $0x4] sm:$0xf]  ;;  %v426_v9 = vld [vmem:[#allocation3 + $0x8] sm:$0xf0] }
   0xe   :  { %vm91_vm0 = vcmask 261120   ;;  %101 = vmatpush.bf16.msra.mxu0 %v433_v3  ;;  %v425_v10 = vor.u32 %v569_v6, %v424_v5  ;;  %v498_v11 = vld [vmem:[#allocation5 + $0x70] sm:$0xf]  ;;  %v587_v12 = vld [vmem:[#allocation5 + $0x74] sm:$0xf0]  ;;  %v429_v14 = vor.u32 %v568_v8, %v426_v9  ;;  %vm414_vm1 = vcmask 57344  }
   0xf   :  { %v562_v13 = vld [vmem:[#allocation5 + $0xf0] sm:$0xf]  ;;  %114 = vmatpush.bf16.msra.mxu1 %v437_v7  ;;  %v499_v15 = vor.u32 %v587_v12, %v498_v11  ;;  %v603_v16 = vld [vmem:[#allocation5 + $0xf4] sm:$0xf0]  ;;  %v586_v17 = vld [vmem:[#allocation5 + $0x74] sm:$0xf] }
  0x10   :  { %v500_v18 = vld [vmem:[#allocation5 + $0x78] sm:$0xf0]  ;;  %v60_v19 = vld [vmem:[%s730_s0] sm:$0xf]  ;;  %v563_v20 = vor.u32 %v603_v16, %v562_v13  ;;  %v602_v22 = vld [vmem:[#allocation5 + $0xf4] sm:$0xf] }
  0x11   :  { %v503_v21 = vor.u32 %v586_v17, %v500_v18  ;;  %v564_v23 = vld [vmem:[#allocation5 + $0xf8] sm:$0xf0]  ;;  %v490_v24 = vld [vmem:[#allocation5 + $0x60] sm:$0xf]  ;;  %323 = vmatpush.bf16.msra.mxu2 %v499_v15  ;;  %v585_v26 = vld [vmem:[#allocation5 + $0x64] sm:$0xf0] }
  0x12   :  { %v567_v25 = vor.u32 %v602_v22, %v564_v23  ;;  %v554_v27 = vld [vmem:[#allocation5 + $0xe0] sm:$0xf]  ;;  %v601_v28 = vld [vmem:[#allocation5 + $0xe4] sm:$0xf0]  ;;  %102 = vmatpush.bf16.msra.mxu0 %v425_v10  ;;  %336 = vmatpush.bf16.msra.mxu3 %v563_v20  ;;  %v491_v29 = vor.u32 %v585_v26, %v490_v24  ;;  %v584_v31 = vld [vmem:[#allocation5 + $0x64] sm:$0xf] }
  0x13   :  { %v555_v30 = vor.u32 %v601_v28, %v554_v27  ;;  %v492_v32 = vld [vmem:[#allocation5 + $0x68] sm:$0xf0]  ;;  %v600_v33 = vld [vmem:[#allocation5 + $0xe4] sm:$0xf]  ;;  %115 = vmatpush.bf16.msra.mxu1 %v429_v14  ;;  %v482_v36 = vld [vmem:[#allocation5 + $0x50] sm:$0xf] }
  0x14   :  { %v495_v34 = vor.u32 %v584_v31, %v492_v32  ;;  %v556_v35 = vld [vmem:[#allocation5 + $0xe8] sm:$0xf0]  ;;  %v583_v37 = vld [vmem:[#allocation5 + $0x54] sm:$0xf0]  ;;  %v546_v39 = vld [vmem:[#allocation5 + $0xd0] sm:$0xf] }
  0x15   :  { %v559_v38 = vor.u32 %v600_v33, %v556_v35  ;;  %v599_v40 = vld [vmem:[#allocation5 + $0xd4] sm:$0xf0]  ;;  %v582_v41 = vld [vmem:[#allocation5 + $0x54] sm:$0xf]  ;;  %438 = vmatmul.msk.bf16.vlgmr.msra.gmra.mxu0 %vm91_vm0, %v60_v19  ;;  %324 = vmatpush.bf16.msra.mxu2 %v491_v29  ;;  %v483_v42 = vor.u32 %v583_v37, %v482_v36  ;;  %v484_v43 = vld [vmem:[#allocation5 + $0x58] sm:$0xf0] }
  0x16   :  { %349 = vmatpush.bf16.msrb.mxu0 %v503_v21  ;;  %v598_v44 = vld [vmem:[#allocation5 + $0xd4] sm:$0xf]  ;;  %v548_v45 = vld [vmem:[#allocation5 + $0xd8] sm:$0xf0]  ;;  %439 = vmatmul.msk.bf16.vlgmr.msra.gmra.mxu1 %vm91_vm0, %v60_v19  ;;  %v547_v46 = vor.u32 %v599_v40, %v546_v39  ;;  %v474_v47 = vld [vmem:[#allocation5 + $0x40] sm:$0xf]  ;;  %v487_v49 = vor.u32 %v582_v41, %v484_v43 }
  0x17   :  { %362 = vmatpush.bf16.msrb.mxu1 %v567_v25  ;;  %337 = vmatpush.bf16.msra.mxu3 %v555_v30  ;;  %v581_v48 = vld [vmem:[#allocation5 + $0x44] sm:$0xf0]  ;;  %v538_v50 = vld [vmem:[#allocation5 + $0xc0] sm:$0xf]  ;;  %v551_v52 = vor.u32 %v598_v44, %v548_v45  ;;  %v580_v53 = vld [vmem:[#allocation5 + $0x44] sm:$0xf] }
  0x18   :  { %v597_v51 = vld [vmem:[#allocation5 + $0xc4] sm:$0xf0]  ;;  %v476_v54 = vld [vmem:[#allocation5 + $0x48] sm:$0xf0]  ;;  %v475_v55 = vor.u32 %v581_v48, %v474_v47  ;;  %v596_v56 = vld [vmem:[#allocation5 + $0xc4] sm:$0xf] }
  0x19   :  { %325 = vmatpush.bf16.msra.mxu2 %v483_v42  ;;  %v540_v57 = vld [vmem:[#allocation5 + $0xc8] sm:$0xf0]  ;;  %v539_v58 = vor.u32 %v597_v51, %v538_v50  ;;  %v466_v59 = vld [vmem:[#allocation5 + $0x30] sm:$0xf]  ;;  %v579_v60 = vld [vmem:[#allocation5 + $0x34] sm:$0xf0]  ;;  %v479_v61 = vor.u32 %v580_v53, %v476_v54 }
  0x1a   :  { %350 = vmatpush.bf16.msrb.mxu0 %v495_v34  ;;  %v530_v62 = vld [vmem:[#allocation5 + $0xb0] sm:$0xf]  ;;  %v595_v63 = vld [vmem:[#allocation5 + $0xb4] sm:$0xf0]  ;;  %v543_v0 = vor.u32 %v596_v56, %v540_v57  ;;  %v578_v1 = vld [vmem:[#allocation5 + $0x34] sm:$0xf]  ;;  %v467_v3 = vor.u32 %v579_v60, %v466_v59 }
  0x1b   :  { %363 = vmatpush.bf16.msrb.mxu1 %v559_v38  ;;  %338 = vmatpush.bf16.msra.mxu3 %v547_v46  ;;  %v468_v2 = vld [vmem:[#allocation5 + $0x38] sm:$0xf0]  ;;  %v594_v4 = vld [vmem:[#allocation5 + $0xb4] sm:$0xf]  ;;  %v531_v6 = vor.u32 %v595_v63, %v530_v62  ;;  %v458_v7 = vld [vmem:[#allocation5 + $0x20] sm:$0xf] }
  0x1c   :  { %v532_v5 = vld [vmem:[#allocation5 + $0xb8] sm:$0xf0]  ;;  %v577_v8 = vld [vmem:[#allocation5 + $0x24] sm:$0xf0]  ;;  %v471_v9 = vor.u32 %v578_v1, %v468_v2  ;;  %v522_v10 = vld [vmem:[#allocation5 + $0xa0] sm:$0xf] }
  0x1d   :  { %326 = vmatpush.bf16.msra.mxu2 %v475_v55  ;;  %v593_v11 = vld [vmem:[#allocation5 + $0xa4] sm:$0xf0]  ;;  %v535_v12 = vor.u32 %v594_v4, %v532_v5  ;;  %v576_v13 = vld [vmem:[#allocation5 + $0x24] sm:$0xf]  ;;  %v460_v14 = vld [vmem:[#allocation5 + $0x28] sm:$0xf0]  ;;  %v459_v15 = vor.u32 %v577_v8, %v458_v7 }
  0x1e   :  { %351 = vmatpush.bf16.msrb.mxu0 %v487_v49  ;;  %v592_v16 = vld [vmem:[#allocation5 + $0xa4] sm:$0xf]  ;;  %v524_v17 = vld [vmem:[#allocation5 + $0xa8] sm:$0xf0]  ;;  %v523_v18 = vor.u32 %v593_v11, %v522_v10  ;;  %v463_v19 = vor.u32 %v576_v13, %v460_v14  ;;  %v450_v21 = vld [vmem:[#allocation5 + $0x10] sm:$0xf] }
  0x1f   :  { %364 = vmatpush.bf16.msrb.mxu1 %v551_v52  ;;  %339 = vmatpush.bf16.msra.mxu3 %v539_v58  ;;  %v527_v20 = vor.u32 %v592_v16, %v524_v17  ;;  %v575_v22 = vld [vmem:[#allocation5 + $0x14] sm:$0xf0]  ;;  %v514_v23 = vld [vmem:[#allocation5 + $0x90] sm:$0xf]  ;;  %v574_v26 = vld [vmem:[#allocation5 + $0x14] sm:$0xf]  ;;  %v381_v17 = vstv %s736_s6 }
  0x20   :  { %v451_v24 = vor.u32 %v575_v22, %v450_v21  ;;  %v591_v25 = vld [vmem:[#allocation5 + $0x94] sm:$0xf0]  ;;  %v452_v27 = vld [vmem:[#allocation5 + $0x18] sm:$0xf0]  ;;  %v590_v30 = vld [vmem:[#allocation5 + $0x94] sm:$0xf] }
  0x21   :  { %327 = vmatpush.bf16.msra.mxu2 %v467_v3  ;;  %v515_v28 = vor.u32 %v591_v25, %v514_v23  ;;  %v455_v29 = vor.u32 %v574_v26, %v452_v27  ;;  %v516_v31 = vld [vmem:[#allocation5 + $0x98] sm:$0xf0]  ;;  %v442_v33 = vld [vmem:[#allocation5] sm:$0xf]  ;;  %v573_v34 = vld [vmem:[#allocation5 + $0x4] sm:$0xf0] }
  0x22   :  { %352 = vmatpush.bf16.msrb.mxu0 %v479_v61  ;;  %v519_v32 = vor.u32 %v590_v30, %v516_v31  ;;  %v506_v35 = vld [vmem:[#allocation5 + $0x80] sm:$0xf]  ;;  %v443_v36 = vor.u32 %v573_v34, %v442_v33  ;;  %v589_v37 = vld [vmem:[#allocation5 + $0x84] sm:$0xf0]  ;;  %v572_v38 = vld [vmem:[#allocation5 + $0x4] sm:$0xf] }
  0x23   :  { %365 = vmatpush.bf16.msrb.mxu1 %v543_v0  ;;  %340 = vmatpush.bf16.msra.mxu3 %v531_v6  ;;  %v444_v39 = vld [vmem:[#allocation5 + $0x8] sm:$0xf0]  ;;  %v507_v40 = vor.u32 %v589_v37, %v506_v35  ;;  %v588_v42 = vld [vmem:[#allocation5 + $0x84] sm:$0xf]  ;;  %v65_v45 = vld [vmem:[%s732_s2] sm:$0x3] }
  0x24   :  { %v447_v41 = vor.u32 %v572_v38, %v444_v39  ;;  %v508_v43 = vld [vmem:[#allocation5 + $0x88] sm:$0xf0]  ;;  %v67_v46 = vperm.slane %v65_v45, 0  ;;  %v68_v47 = vperm.slane %v65_v45, 1  ;;  %v377_v58 = vld [vmem:[%s735_s5] sm:$0x3] }
  0x25   :  { %328 = vmatpush.bf16.msra.mxu2 %v459_v15  ;;  %v511_v44 = vor.u32 %v588_v42, %v508_v43  ;;  %383 = vst [vmem:[#allocation1] ss:$9 sm:$0xff] %v377_v58  ;;  %v157_v59 = vld [vmem:[%s734_s4] sm:$0x3] }
  0x26   :  { %353 = vmatpush.bf16.msrb.mxu0 %v471_v9  ;;  %v160_v60 = vperm.slane %v157_v59, 1  ;;  %v159_v1 = vperm.slane %v157_v59, 0 }
  0x27   :  { %366 = vmatpush.bf16.msrb.mxu1 %v535_v12  ;;  %341 = vmatpush.bf16.msra.mxu3 %v523_v18 }
  0x29   :  { %329 = vmatpush.bf16.msra.mxu2 %v451_v24 }
  0x2a   :  { %354 = vmatpush.bf16.msrb.mxu0 %v463_v19 }
  0x2b   :  { %367 = vmatpush.bf16.msrb.mxu1 %v527_v20  ;;  %342 = vmatpush.bf16.msra.mxu3 %v515_v28 }
  0x2c   :  { %v385_v12 = vld [vmem:[#allocation1 + $0x9] sm:$0xff]  ;;  %v384_v15 = vld [vmem:[#allocation1] sm:$0xff] }
  0x2d   :  { %330 = vmatpush.bf16.msra.mxu2 %v443_v36 }
  0x2e   :  { %355 = vmatpush.bf16.msrb.mxu0 %v455_v29 }
  0x2f   :  { %368 = vmatpush.bf16.msrb.mxu1 %v519_v32  ;;  %343 = vmatpush.bf16.msra.mxu3 %v507_v40 }
  0x32   :  { %356 = vmatpush.bf16.msrb.mxu0 %v447_v41 }
  0x33   :  { %369 = vmatpush.bf16.msrb.mxu1 %v511_v44 }
  0x92   :  { %v104_v48 = vpop.f32.mrf.mxu0 }
  0x93   :  { %v105_v49 = vadd.f32 %v104_v48, %v67_v46  ;;  %v117_v50 = vpop.f32.mrf.mxu1 }
  0x94   :  { %v118_v51 = vadd.f32 %v117_v50, %v68_v47 }
  0x95   :  { %v121_v52 = vmax.f32 %v105_v49, 0.0 }
  0x96   :  { %v122_v53 = vmax.f32 %v118_v51, 0.0 }
  0x97   :  { %v123_v54 = vpack.c.bf16 %v121_v52, %v121_v52 }
  0x98   :  { %v124_v55 = vpack.c.bf16 %v122_v53, %v122_v53 }
  0x99   :  { %331 = vmatmul.bf16.vlgmr.msra.gmra.mxu2 %v123_v54  ;;  %357 = vmatmul.bf16.vlgmr.msrb.gmra.mxu0 %v123_v54 }
  0x9a   :  { %344 = vmatmul.bf16.vlgmr.msra.gmra.mxu3 %v124_v55  ;;  %370 = vmatmul.bf16.vlgmr.msrb.gmra.mxu1 %v124_v55  ;;  %v106_v56 = vpop.f32.mrf.mxu0 }
  0x9b   :  { %v119_v57 = vpop.f32.mrf.mxu1 }
 0x116   :  { %v358_v61 = vpop.f32.mrf.mxu0 }
 0x117   :  { %v359_v62 = vadd.f32 %v358_v61, %v160_v60  ;;  %v371_v63 = vpop.f32.mrf.mxu1 }
 0x119   :  { %v372_v0 = vadd.f32 %v371_v63, %v359_v62 }
 0x11b   :  { %v376_v2 = vmax.f32 %v372_v0, 0.0 }
 0x11c   :  { %v332_v3 = vpop.f32.mrf.mxu2 }
 0x11d   :  { %v333_v4 = vadd.f32 %v332_v3, %v159_v1  ;;  %v345_v5 = vpop.f32.mrf.mxu3  ;;  %v379_v6 = vpack.c.bf16 %v376_v2, %v376_v2 }
 0x11e   :  { %v360_v7 = vpop.f32.mrf.mxu0 }
 0x11f   :  { %v346_v8 = vadd.f32 %v345_v5, %v333_v4  ;;  %v373_v9 = vpop.f32.mrf.mxu1  ;;  %408 = vmatpush.bf16.xpose.msrb.mxu3 %v379_v6 }
 0x121   :  { %v375_v10 = vmax.f32 %v346_v8, 0.0 }
 0x123   :  { %v378_v11 = vpack.c.bf16 %v375_v10, %v375_v10 }
 0x124   :  { %v334_v13 = vpop.f32.mrf.mxu2 }
 0x125   :  { %v347_v14 = vpop.f32.mrf.mxu3  ;;  %395 = vmatpush.bf16.xpose.msrb.mxu2 %v378_v11 }
 0x126   :  { %409 = vmatmul.bf16.vlgmr.msrb.gmra.mxu3 %v385_v12 }
 0x12c   :  { %396 = vmatmul.bf16.vlgmr.msrb.gmra.mxu2 %v384_v15 }
 0x1a9   :  { %v410_v16 = vpop.f32.mrf.mxu3 }
 0x1af   :  { %v397_v18 = vpop.f32.mrf.mxu2 }
 0x1b0   :  { %v398_v19 = vadd.f32 %v397_v18, %v381_v17 }
 0x1b1   :  { %v412_v20 = vpop.f32.mrf.mxu3 }
 0x1b2   :  { %v411_v21 = vadd.f32 %v410_v16, %v398_v19 }
 0x1b4   :  { %415 = vst.msk [vmem:[%s737_s7] sm:$0x1] %vm414_vm1, %v411_v21 }
 0x1b7   :  { %v399_v22 = vpop.f32.mrf.mxu2 }
 0x1b8   :  { %420 = vsyncpa [#allocation4], 1 }
 0x1b9   :  { %421 = vsyncpa [#allocation6], 1 }

</bundles_post_ra>
